<compile_context>
chip_gen: v6e
topology: v6e:2x2x1
jax: 0.10.0
libtpu: 0.0.40
codegen_flags: <defaults>
</compile_context>

<pallas_src>
import jax
import jax.numpy as jnp
from jax.experimental import pallas as pl
from jax.experimental.pallas import tpu as pltpu

IN_DIM = 381
HID_DIM = 50
OUT_DIM = 2
LANE = 128          # lane-dense slab: emb in lanes [0:50], logits in [50:52]
TILE_B_MAX = 8192   # bf16 x tile ~6 MiB + f32 slab tile ~4 MiB, double-buffered
                    # ~21 MiB total -> fits v7x's 64 MiB physical VMEM.


def _round_up(n, m):
    return ((n + m - 1) // m) * m


def _pick_tile_b(B):
    """Batch tile: multiples of 16 (bf16 sublane packing), >=2 grid steps for
    large B (so v7x's two TensorCores both get work), capped at TILE_B_MAX."""
    if B <= 1024:
        return _round_up(max(B, 16), 16)
    return min(TILE_B_MAX, _round_up(pl.cdiv(B, 2), 16))


def mlp_kernel(x_ref, w1_ref, w2_ref, b_ref, slab_ref):
    # fc1: bf16 operands on the MXU, f32 accumulation.  Packed bias means
    #   emb_full lanes [0:50]  = x @ W1 + b1     (the "embedding")
    #   emb_full lanes [50:52] = b2
    #   emb_full lanes [52:]   = 0
    emb_full = jnp.dot(x_ref[...], w1_ref[...],
                       preferred_element_type=jnp.float32) + b_ref[...]

    # ReLU + fc2.  relu(b2) in lanes [50:52] only meets zero rows of the packed
    # w2, so it cannot perturb the fc2 result.
    h = jnp.maximum(emb_full, 0.0).astype(jnp.bfloat16)
    fc2 = jnp.dot(h, w2_ref[...], preferred_element_type=jnp.float32)

    # One lane-dense 128-wide store: lanes [0:50] = embedding, lanes [50:52] =
    # fc2 output (b2 already sits there inside emb_full), lanes [52:] = 0.
    # NOTE: an Inf/NaN in a row of x poisons that row's packed lanes -- but the
    # same row would be non-finite under the torch forward too.
    slab_ref[...] = emb_full + fc2


def pack_params(w1, b1, w2, b2):
    """Pack (in,out)-layout params into lane-dense kernel form (done once)."""
    w1_p = (jnp.zeros((IN_DIM, LANE), jnp.bfloat16)
            .at[:, :HID_DIM].set(w1.astype(jnp.bfloat16)))
    w2_p = (jnp.zeros((LANE, LANE), jnp.bfloat16)
            .at[:HID_DIM, HID_DIM:HID_DIM + OUT_DIM].set(w2.astype(jnp.bfloat16)))
    b_p = (jnp.zeros((1, LANE), jnp.float32)
           .at[0, :HID_DIM].set(b1.astype(jnp.float32))
           .at[0, HID_DIM:HID_DIM + OUT_DIM].set(b2.astype(jnp.float32)))
    return w1_p, w2_p, b_p


def mlp_forward_slab(x, w1_p, w2_p, b_p):
    """Raw (B, 128) f32 slab: lanes [0:50] = embedding, lanes [50:52] = logits.

    Prefer this entry point when the consumer can read the lane-dense slab (or
    fuse the slicing itself); mlp_forward() below slices only for interface
    parity with the torch module.
    """
    B = x.shape[0]
    # bf16 HBM stream.  Producing x as bf16 upstream makes this a no-op;
    # otherwise XLA inserts one cast (still a net MXU win, and a bandwidth win
    # whenever the cast fuses into x's producer).
    if x.dtype != jnp.bfloat16:
        x = x.astype(jnp.bfloat16)

    tile_b = _pick_tile_b(B)
    num_tiles = pl.cdiv(B, tile_b)

    cost = pl.CostEstimate(
        flops=2 * B * (IN_DIM * LANE + LANE * LANE),
        transcendentals=0,
        bytes_accessed=(2 * B * IN_DIM                                 # x (bf16)
                        + 2 * (w1_p.size + w2_p.size) + 4 * b_p.size   # weights
                        + 4 * B * LANE),                               # slab (f32)
    )

    return pl.pallas_call(
        mlp_kernel,
        out_shape=jax.ShapeDtypeStruct((B, LANE), jnp.float32),
        grid_spec=pltpu.PrefetchScalarGridSpec(
            num_scalar_prefetch=0,
            grid=(num_tiles,),
            in_specs=[
                # x tiled over batch; last block dim == full array dim (381) so
                # the ragged K is masked in VMEM -- no HBM-side pad/copy of x.
                pl.BlockSpec((tile_b, IN_DIM), lambda i: (i, 0)),
                pl.BlockSpec((IN_DIM, LANE), lambda i: (0, 0)),   # w1 (VMEM-resident)
                pl.BlockSpec((LANE, LANE), lambda i: (0, 0)),     # w2 (packed)
                pl.BlockSpec((1, LANE), lambda i: (0, 0)),        # b1|b2 packed
            ],
            out_specs=pl.BlockSpec((tile_b, LANE), lambda i: (i, 0)),
        ),
        compiler_params=pltpu.CompilerParams(
            dimension_semantics=("parallel",),
            vmem_limit_bytes=32 * 1024 * 1024,
        ),
        cost_estimate=cost,
    )(x, w1_p, w2_p, b_p)


def mlp_forward(x, w1, b1, w2, b2):
    """Torch-interface forward: returns (out, embedding) like the nn.Module."""
    w1_p, w2_p, b_p = pack_params(w1, b1, w2, b2)
    slab = mlp_forward_slab(x, w1_p, w2_p, b_p)
    # TODO(synk): downstream consumers should read the slab directly (or fuse
    # these slices into their own op) to avoid an extra lane-strided HBM pass.
    emb = slab[:, :HID_DIM]
    out = slab[:, HID_DIM:HID_DIM + OUT_DIM]
    return out, emb


def init_params(key):
    """Deterministic init mimicking torch.nn.Linear (uniform +/- 1/sqrt(fan_in))."""
    k1, k2, k3, k4 = jax.random.split(key, 4)
    bound1 = 1.0 / (IN_DIM ** 0.5)
    bound2 = 1.0 / (HID_DIM ** 0.5)
    # stored as (in, out), i.e. transposed relative to torch's (out, in)
    w1 = jax.random.uniform(k1, (IN_DIM, HID_DIM), jnp.float32, -bound1, bound1)
    b1 = jax.random.uniform(k2, (HID_DIM,), jnp.float32, -bound1, bound1)
    w2 = jax.random.uniform(k3, (HID_DIM, OUT_DIM), jnp.float32, -bound2, bound2)
    b2 = jax.random.uniform(k4, (OUT_DIM,), jnp.float32, -bound2, bound2)
    return w1, b1, w2, b2


if __name__ == "__main__":
    key = jax.random.PRNGKey(0)
    kx, kp = jax.random.split(key)
    w1, b1, w2, b2 = init_params(kp)

    fwd = jax.jit(mlp_forward)

    def ref_forward_bf16(x):
        # mirrors the kernel's math: bf16 operands, f32 accumulation
        xb = x.astype(jnp.bfloat16).astype(jnp.float32)
        w1b = w1.astype(jnp.bfloat16).astype(jnp.float32)
        w2b = w2.astype(jnp.bfloat16).astype(jnp.float32)
        emb = xb @ w1b + b1
        h = jnp.maximum(emb, 0.0).astype(jnp.bfloat16).astype(jnp.float32)
        return h @ w2b + b2, emb

    ok = True
    # exact-tile batch and a ragged batch (exercises the no-pad masked path)
    for B in (16, 205):
        x = jax.random.normal(jax.random.fold_in(kx, B), (B, IN_DIM), jnp.float32)
        out, emb = jax.block_until_ready(fwd(x, w1, b1, w2, b2))

        out_ref, emb_ref = ref_forward_bf16(x)
        ok &= bool(jnp.allclose(emb, emb_ref, atol=5e-3, rtol=5e-3))
        ok &= bool(jnp.allclose(out, out_ref, atol=5e-3, rtol=5e-3))

        # full-f32 (torch-equivalent) forward, bf16-level tolerance
        emb_f32 = x @ w1 + b1
        out_f32 = jnp.maximum(emb_f32, 0.0) @ w2 + b2
        ok &= bool(jnp.allclose(emb, emb_f32, atol=5e-2, rtol=5e-2))
        ok &= bool(jnp.allclose(out, out_f32, atol=5e-2, rtol=5e-2))

    assert ok, "Pallas MLP kernel mismatch vs reference"
    print("KERNEL_OK")
</pallas_src>

<mosaic_0001>
module attributes {stable_mosaic.version = 11 : i64} {
  func.func @mlp_kernel(%arg0: i32, %arg1: memref<16x381xbf16, #tpu.memory_space<vmem>>, %arg2: memref<381x128xbf16, #tpu.memory_space<vmem>>, %arg3: memref<128x128xbf16, #tpu.memory_space<vmem>>, %arg4: memref<1x128xf32, #tpu.memory_space<vmem>>, %arg5: memref<16x128xf32, #tpu.memory_space<vmem>>) attributes {dimension_semantics = [#tpu.dimension_semantics<parallel>], iteration_bounds = array<i64: 1>, scalar_prefetch = 0 : i64, scratch_operands = 0 : i64, tpu.core_type = #tpu.core_type<tc>, window_params = [{transform_indices = @transform_0, window_bounds = array<i64: 16, 381>}, {pipeline_mode = #tpu.pipeline_mode<synchronous>, transform_indices = @transform_1, window_bounds = array<i64: 381, 128>}, {pipeline_mode = #tpu.pipeline_mode<synchronous>, transform_indices = @transform_2, window_bounds = array<i64: 128, 128>}, {pipeline_mode = #tpu.pipeline_mode<synchronous>, transform_indices = @transform_3, window_bounds = array<i64: 1, 128>}, {transform_indices = @transform_4, window_bounds = array<i64: 16, 128>}]} {
    %c0 = arith.constant 0 : index
    %c0_0 = arith.constant 0 : index
    %0 = vector.load %arg1[%c0, %c0_0] : memref<16x381xbf16, #tpu.memory_space<vmem>>, vector<16x381xbf16>
    %c0_1 = arith.constant 0 : index
    %c0_2 = arith.constant 0 : index
    %1 = vector.load %arg2[%c0_1, %c0_2] : memref<381x128xbf16, #tpu.memory_space<vmem>>, vector<381x128xbf16>
    %cst = arith.constant dense<0.000000e+00> : vector<16x128xf32>
    %2 = tpu.matmul %0, %1, %cst {dimension_numbers = #tpu.dot_dimension_numbers<[1], [0], [0], [1], [0, 0, 1, 1], [], []>} : vector<16x381xbf16>, vector<381x128xbf16>, vector<16x128xf32> -> vector<16x128xf32>
    %c0_3 = arith.constant 0 : index
    %c0_4 = arith.constant 0 : index
    %3 = vector.load %arg4[%c0_3, %c0_4] : memref<1x128xf32, #tpu.memory_space<vmem>>, vector<1x128xf32>
    %4 = vector.broadcast %3 : vector<1x128xf32> to vector<16x128xf32>
    %5 = arith.addf %2, %4 : vector<16x128xf32>
    %cst_5 = arith.constant 0.000000e+00 : f32
    %6 = vector.broadcast %cst_5 : f32 to vector<16x128xf32>
    %7 = arith.maximumf %5, %6 : vector<16x128xf32>
    %8 = arith.truncf %7 : vector<16x128xf32> to vector<16x128xbf16>
    %c0_6 = arith.constant 0 : index
    %c0_7 = arith.constant 0 : index
    %9 = vector.load %arg3[%c0_6, %c0_7] : memref<128x128xbf16, #tpu.memory_space<vmem>>, vector<128x128xbf16>
    %cst_8 = arith.constant dense<0.000000e+00> : vector<16x128xf32>
    %10 = tpu.matmul %8, %9, %cst_8 {dimension_numbers = #tpu.dot_dimension_numbers<[1], [0], [0], [1], [0, 0, 1, 1], [], []>} : vector<16x128xbf16>, vector<128x128xbf16>, vector<16x128xf32> -> vector<16x128xf32>
    %11 = arith.addf %5, %10 : vector<16x128xf32>
    %c0_9 = arith.constant 0 : index
    %c0_10 = arith.constant 0 : index
    %12 = vector.load %arg5[%c0_9, %c0_10] : memref<16x128xf32, #tpu.memory_space<vmem>>, vector<16x128xf32>
    tpu.vector_store %arg5[%c0_9, %c0_10], %11 {strides = array<i32>} : memref<16x128xf32, #tpu.memory_space<vmem>>, vector<16x128xf32>,
    return
  }
  func.func @transform_0(%arg0: i32) -> (i32, i32) {
    %c0_i32 = arith.constant 0 : i32
    %c0_i32_0 = arith.constant 0 : i32
    return %arg0, %c0_i32 : i32, i32
  }
  func.func @transform_1(%arg0: i32) -> (i32, i32) {
    %c0_i32 = arith.constant 0 : i32
    %c0_i32_0 = arith.constant 0 : i32
    %c0_i32_1 = arith.constant 0 : i32
    return %c0_i32, %c0_i32_0 : i32, i32
  }
  func.func @transform_2(%arg0: i32) -> (i32, i32) {
    %c0_i32 = arith.constant 0 : i32
    %c0_i32_0 = arith.constant 0 : i32
    %c0_i32_1 = arith.constant 0 : i32
    return %c0_i32, %c0_i32_0 : i32, i32
  }
  func.func @transform_3(%arg0: i32) -> (i32, i32) {
    %c0_i32 = arith.constant 0 : i32
    %c0_i32_0 = arith.constant 0 : i32
    %c0_i32_1 = arith.constant 0 : i32
    return %c0_i32, %c0_i32_0 : i32, i32
  }
  func.func @transform_4(%arg0: i32) -> (i32, i32) {
    %c0_i32 = arith.constant 0 : i32
    %c0_i32_0 = arith.constant 0 : i32
    return %arg0, %c0_i32 : i32, i32
  }
}

</mosaic_0001>

<bundles_post_ra>
// kernel: mlp_forward.1
= control target key start
LH: loop header
LB: loop body
LE: loop exit
PB: predicated region body
PF: predicated region fallthrough
CT: control target
= control target key end

     0   :  { %vm239_vm0 = vcmask 1045504   ;;  %vm240_vm1 = vcmask 1046528   ;;  %v600_v1 = vmov 0.0   ;;  %v601_v2 = vmov 65535   ;;  %s762_s1 = inlined_call_operand.vmem [shape: bf16[381,128], index: 1, kind: input, shape index: {}]   ;;  %s763_s0 = inlined_call_operand.vmem [shape: bf16[16,381], index: 0, kind: input, shape index: {}]   ;;  %s764_s2 = inlined_call_operand.vmem [shape: bf16[128,128], index: 2, kind: input, shape index: {}]   ;;  %s765_s3 = inlined_call_operand.vmem [shape: f32[1,128], index: 3, kind: input, shape index: {}]   ;;  %s766_s4 = inlined_call_operand.vmem [shape: f32[16,128], index: 4, kind: output, shape index: {}]  }
   0x1   :  { %v564_v0 = vld [vmem:[%s762_s1 + $0x78] sm:$0xff]   ;;  %521 = vmatprep.subr.bf16.mxu1 %v600_v1  ;;  %v241_v3 = vsel %vm239_vm0, 4294967295, %v601_v2  ;;  %v567_v7 = vld [vmem:[%s762_s1 + $0x70] sm:$0xff]   ;;  %vm602_vm2 = vmmov 0   ;;  %v570_v11 = vld [vmem:[%s762_s1 + $0x68] sm:$0xff]   ;;  %vm235_vm3 = vcmask 1022976  }
   0x2   :  { %v565_v4 = vld [vmem:[%s762_s1 + $0x38] sm:$0xff]   ;;  %v242_v5 = vsel %vm240_vm1, %v241_v3, 0  ;;  %481 = vmatprep.subr.bf16.mxu0 %v564_v0  ;;  %v568_v9 = vld [vmem:[%s762_s1 + $0x30] sm:$0xff]   ;;  %537 = vmatprep.mubr.msk.bf16.mxu1 %vm602_vm2, %v600_v1  ;;  %v571_v12 = vld [vmem:[%s762_s1 + $0x28] sm:$0xff]  }
   0x3   :  { %v566_v6 = vld [vmem:[%s762_s1 + $0xb8] sm:$0x7f]   ;;  %482 = vmatpush3.bf16.msra.mxu0 %v565_v4  ;;  %v569_v10 = vld [vmem:[%s762_s1 + $0xb0] sm:$0xff]   ;;  %v573_v13 = vld [vmem:[%s762_s1 + $0x60] sm:$0xff]  }
   0x4   :  { %v244_v8 = vand.u32 %v566_v6, %v242_v5  ;;  %483 = vmatprep.subr.bf16.mxu0 %v567_v7  ;;  %v572_v14 = vld [vmem:[%s762_s1 + $0xa8] sm:$0xff]   ;;  %v574_v15 = vld [vmem:[%s762_s1 + $0x20] sm:$0xff]   ;;  %v576_v16 = vld [vmem:[%s762_s1 + $0x58] sm:$0xff]  }
   0x5   :  { %v575_v17 = vld [vmem:[%s762_s1 + $0xa0] sm:$0xff]   ;;  %v577_v18 = vld [vmem:[%s762_s1 + $0x18] sm:$0xff]   ;;  %v579_v19 = vld [vmem:[%s762_s1 + $0x50] sm:$0xff]  }
   0x6   :  { %522 = vmatpush3.bf16.msra.mxu1 %v244_v8  ;;  %v578_v20 = vld [vmem:[%s762_s1 + $0x98] sm:$0xff]   ;;  %v580_v21 = vld [vmem:[%s762_s1 + $0x10] sm:$0xff]   ;;  %v582_v22 = vld [vmem:[%s762_s1 + $0x48] sm:$0xff]  }
   0x7   :  { %484 = vmatpush3.bf16.msra.mxu0 %v568_v9  ;;  %523 = vmatprep.subr.bf16.mxu1 %v600_v1  ;;  %v581_v23 = vld [vmem:[%s762_s1 + $0x90] sm:$0xff]   ;;  %v583_v24 = vld [vmem:[%s762_s1 + $0x8] sm:$0xff]   ;;  %v585_v25 = vld [vmem:[%s762_s1 + $0x40] sm:$0xff]  }
   0x8   :  { %485 = vmatprep.subr.bf16.mxu0 %v570_v11  ;;  %v590_v26 = vld [vmem:[%s763_s0 + $0x4] ss:$12 sps:$4 sm:$0xff]   ;;  %v584_v27 = vld [vmem:[%s762_s1 + $0x88] sm:$0xff]   ;;  %v592_v31 = vld [vmem:[%s764_s2 + $0x38] sm:$0xff]  }
   0x9   :  { %v586_v28 = vld [vmem:[%s762_s1] sm:$0xff]   ;;  %278 = vmatprep.mubr.bf16.mxu0 %v590_v26  ;;  %v591_v32 = vld [vmem:[%s763_s0 + $0x8] ss:$12 sps:$4 sm:$0xff]   ;;  %v596_v36 = vld [vmem:[%s764_s2 + $0x18] sm:$0xff]  }
   0xa   :  { %524 = vmatpush3.bf16.msra.mxu1 %v569_v10  ;;  %v587_v29 = vld [vmem:[%s762_s1 + $0x80] sm:$0xff]   ;;  %v593_v33 = vld [vmem:[%s764_s2 + $0x30] sm:$0xff]   ;;  %v594_v34 = vld [vmem:[%s764_s2 + $0x28] sm:$0xff]  }
   0xb   :  { %486 = vmatpush3.bf16.msra.mxu0 %v571_v12  ;;  %525 = vmatprep.subr.bf16.mxu1 %v600_v1  ;;  %v588_v30 = vld [vmem:[%s763_s0] ss:$12 sps:$4 sm:$0xff]   ;;  %v597_v37 = vld [vmem:[%s764_s2 + $0x10] sm:$0xff]  }
   0xc   :  { %487 = vmatprep.subr.bf16.mxu0 %v573_v13  ;;  %v595_v35 = vld [vmem:[%s764_s2 + $0x20] sm:$0xff]   ;;  %v598_v38 = vld [vmem:[%s764_s2 + $0x8] sm:$0xff]  }
   0xd   :  { %v599_v39 = vld [vmem:[%s764_s2] sm:$0xff]  }
   0xe   :  { %526 = vmatpush3.bf16.msra.mxu1 %v572_v14  ;;  %v444_v41 = vld [vmem:[%s765_s3] ss:$0 sm:$0xff] }
   0xf   :  { %488 = vmatpush3.bf16.msra.mxu0 %v574_v15  ;;  %527 = vmatprep.subr.bf16.mxu1 %v600_v1 }
  0x10   :  { %489 = vmatprep.subr.bf16.mxu0 %v576_v16 }
  0x12   :  { %528 = vmatpush3.bf16.msra.mxu1 %v575_v17 }
  0x13   :  { %490 = vmatpush3.bf16.msra.mxu0 %v577_v18  ;;  %529 = vmatprep.subr.bf16.mxu1 %v600_v1 }
  0x14   :  { %491 = vmatprep.subr.bf16.mxu0 %v579_v19 }
  0x16   :  { %530 = vmatpush3.bf16.msra.mxu1 %v578_v20 }
  0x17   :  { %492 = vmatpush3.bf16.msra.mxu0 %v580_v21  ;;  %531 = vmatprep.subr.bf16.mxu1 %v600_v1 }
  0x18   :  { %493 = vmatprep.subr.bf16.mxu0 %v582_v22 }
  0x1a   :  { %532 = vmatpush3.bf16.msra.mxu1 %v581_v23 }
  0x1b   :  { %494 = vmatpush3.bf16.msra.mxu0 %v583_v24  ;;  %533 = vmatprep.subr.bf16.mxu1 %v600_v1 }
  0x1c   :  { %495 = vmatprep.subr.bf16.mxu0 %v585_v25 }
  0x1e   :  { %534 = vmatpush3.bf16.msra.mxu1 %v584_v27 }
  0x1f   :  { %496 = vmatpush3.bf16.msra.mxu0 %v586_v28  ;;  %535 = vmatprep.subr.bf16.mxu1 %v600_v1 }
  0x20   :  { %541 = vmatprep.subr.bf16.mxu0 %v600_v1 }
  0x22   :  { %536 = vmatpush3.bf16.msra.mxu1 %v587_v29  ;;  %279 = vmatmul.mubr.bf16.vlgmr.msra.gmra.mxu0 %v588_v30 }
  0x23   :  { %542 = vmatpush3.bf16.msra.mxu0 %v592_v31  ;;  %557 = vmatprep.mubr.msk.bf16.mxu0 %vm602_vm2, %v600_v1 }
  0x24   :  { %543 = vmatprep.subr.bf16.mxu0 %v600_v1 }
  0x25   :  { %538 = vmatmul.mubr.msk.bf16.vlgmr.msra.gmra.mxu1 %vm235_vm3, %v591_v32 }
  0x27   :  { %544 = vmatpush3.bf16.msra.mxu0 %v593_v33 }
  0x28   :  { %545 = vmatprep.subr.bf16.mxu0 %v600_v1 }
  0x2b   :  { %546 = vmatpush3.bf16.msra.mxu0 %v594_v34 }
  0x2c   :  { %547 = vmatprep.subr.bf16.mxu0 %v600_v1 }
  0x2f   :  { %548 = vmatpush3.bf16.msra.mxu0 %v595_v35 }
  0x30   :  { %549 = vmatprep.subr.bf16.mxu0 %v600_v1 }
  0x33   :  { %550 = vmatpush3.bf16.msra.mxu0 %v596_v36 }
  0x34   :  { %551 = vmatprep.subr.bf16.mxu0 %v600_v1 }
  0x37   :  { %552 = vmatpush3.bf16.msra.mxu0 %v597_v37 }
  0x38   :  { %553 = vmatprep.subr.bf16.mxu0 %v600_v1 }
  0x3b   :  { %554 = vmatpush3.bf16.msra.mxu0 %v598_v38 }
  0x3c   :  { %555 = vmatprep.subr.bf16.mxu0 %v600_v1 }
  0x3f   :  { %556 = vmatpush3.bf16.msra.mxu0 %v599_v39 }
  0xe2   :  { %v497_v40 = vpop.f32.mrf.mxu0 }
  0xe4   :  { %v498_v42 = vpop.f32.mrf.mxu0 }
  0xe5   :  { %v321_v43 = vpop.f32.mrf.mxu1  ;;  %v499_v44 = vadd.f32 %v498_v42, %v497_v40 }
  0xe6   :  { %v500_v45 = vpop.f32.mrf.mxu0 }
  0xe7   :  { %v281_v46 = vadd.f32 %v499_v44, %v444_v41  ;;  %v539_v47 = vpop.f32.mrf.mxu1 }
  0xe8   :  { %v501_v48 = vpop.f32.mrf.mxu0 }
  0xe9   :  { %v324_v49 = vpop.f32.mrf.mxu1  ;;  %v502_v50 = vadd.f32 %v501_v48, %v500_v45  ;;  %v322_v51 = vadd.f32 %v321_v43, %v281_v46 }
  0xeb   :  { %v284_v52 = vadd.f32 %v502_v50, %v444_v41  ;;  %v540_v53 = vpop.f32.mrf.mxu1  ;;  %v328_v55 = vmax.f32 %v322_v51, 0.0 }
  0xed   :  { %v325_v54 = vadd.f32 %v324_v49, %v284_v52 }
  0xef   :  { %v329_v56 = vmax.f32 %v325_v54, 0.0 }
  0xf1   :  { %v330_v57 = vpack.c.bf16 %v329_v56, %v328_v55 }
  0xf3   :  { %558 = vmatmul.mubr.bf16.vlgmr.msra.gmra.mxu0 %v330_v57 }
 0x1b3   :  { %v429_v58 = vpop.f32.mrf.mxu0 }
 0x1b4   :  { %v436_v59 = vadd.f32 %v429_v58, %v322_v51 }
 0x1b5   :  { %v559_v60 = vpop.f32.mrf.mxu0 }
 0x1b6   :  { %438 = vst [vmem:[%s766_s4] sm:$0xff] %v436_v59 }
 0x1b7   :  { %v432_v61 = vpop.f32.mrf.mxu0 }
 0x1b8   :  { %v437_v62 = vadd.f32 %v432_v61, %v325_v54 }
 0x1b9   :  { %v560_v63 = vpop.f32.mrf.mxu0 }
 0x1ba   :  { %439 = vst [vmem:[%s766_s4 + $0x8] sm:$0xff] %v437_v62 }

</bundles_post_ra>
